<compile_context>
chip_gen: v6e
topology: v6e:2x2x1
jax: 0.10.0
libtpu: 0.0.40
codegen_flags: <defaults>
</compile_context>

<pallas_src>
import math
import functools

import jax
import jax.numpy as jnp
from jax.experimental import pallas as pl
from jax.experimental.pallas import tpu as pltpu


def _mha_kernel(x_ref, mask_ref, wq_ref, bq_ref, wk_ref, bk_ref, wv_ref, bv_ref,
                wo_ref, bo_ref, out_ref, q_scr, k_scr, v_scr,
                *, num_heads, head_dim, seq_len):
    """One grid step == `batch_block` batch elements, rows flattened.

    x_ref        : (M, E)      with M = batch_block * seq_len
    mask_ref     : (Bt, S, S)  int8, 0 means "mask out"
    wq/wk/wv     : (E, E)      per-head (E, D) Linear weights stacked along columns (in, out)
    bq/bk/bv     : (1, E)
    wo           : (E, E) (in, out);  bo: (1, E)
    out_ref      : (M, E)
    q/k/v_scr    : (M, E) VMEM scratch (staged projections, sliced per head)
    """
    M, E = x_ref.shape
    S = seq_len
    Bt = M // S
    D = head_dim
    in_dtype = x_ref.dtype
    scale = jnp.float32(1.0 / math.sqrt(D))

    x = x_ref[...]                                   # keep input dtype on the MXU path

    # ---- fused Q/K/V projections: one (M, E) @ (E, E) matmul each, all heads at once.
    # 1/sqrt(D) folded into the f32 Q accumulate once (before the downcast),
    # instead of scaling every (Bt, S, S) score tile inside the head loop.
    q_scr[...] = ((jnp.dot(x, wq_ref[...], preferred_element_type=jnp.float32)
                   + bq_ref[...]) * scale).astype(in_dtype)
    k_scr[...] = (jnp.dot(x, wk_ref[...], preferred_element_type=jnp.float32)
                  + bk_ref[...]).astype(in_dtype)
    v_scr[...] = (jnp.dot(x, wv_ref[...], preferred_element_type=jnp.float32)
                  + bv_ref[...]).astype(in_dtype)

    # ---- mask predicate hoisted out of the head loop; direct int8 compare.
    keep = mask_ref[...] != 0                        # (Bt, S, S) bool
    neg = jnp.float32(-1e30)                         # finite: fully-masked row -> uniform, never NaN

    # ---- Wo folded into the head loop: accumulate the output in f32 and store
    #      it once (lane-dense (M, E) store).  No ctx scratch, no concat.
    y = jnp.broadcast_to(bo_ref[...].astype(jnp.float32), (M, E))

    for h in range(num_heads):                       # static loop, H is small
        lo = h * D
        qh = q_scr[:, lo:lo + D].reshape(Bt, S, D)   # static ref slices: cheap views
        kh = k_scr[:, lo:lo + D].reshape(Bt, S, D)
        vh = v_scr[:, lo:lo + D].reshape(Bt, S, D)

        scores = jnp.einsum('bqd,bkd->bqk', qh, kh,
                            preferred_element_type=jnp.float32)
        scores = jnp.where(keep, scores, neg)

        m = jnp.max(scores, axis=-1, keepdims=True)
        e = jnp.exp(scores - m)
        denom = jnp.sum(e, axis=-1, keepdims=True)
        w = e * pl.reciprocal(denom, approx=True)    # EUP slot; VALU stays free

        ctx_h = jnp.einsum('bqk,bkd->bqd', w.astype(in_dtype), vh,
                           preferred_element_type=jnp.float32)      # (Bt, S, D) f32
        # (M, D) @ (D, E) slice of Wo, accumulated in f32 -> output stays E-lane-dense.
        y = y + jnp.dot(ctx_h.reshape(M, D).astype(wo_ref.dtype),
                        wo_ref[lo:lo + D, :],
                        preferred_element_type=jnp.float32)

    out_ref[...] = y.astype(out_ref.dtype)           # single lane-dense store


def multi_head_attention(hidden_state, mask, params, *, num_heads,
                         batch_block=None, vmem_limit_bytes=None):
    """JAX wrapper reproducing MultiHeadAttention.forward.

    hidden_state: (B, S, E)
    mask        : (B, S, S); 0 means "mask out" (any nonzero value keeps the position)
    params (all stored as (in, out) so projection is x @ W + b):
        wq, wk, wv: (E, E)  — per-head (E, D) weights fused along output columns
        bq, bk, bv: (1, E)
        wo: (E, E), bo: (1, E)
    """
    wq, bq, wk, bk, wv, bv, wo, bo = params
    B, S, E = hidden_state.shape
    H = num_heads
    D = E // H
    assert H * D == E

    # ---- grid sizing: prefer >=2 grid steps (double-buffered DMA pipeline; the
    # "parallel" axis can shard across v7x's 2 TensorCores) while keeping each
    # block's row count sublane-aligned (multiple of 8).
    if batch_block is None:
        batch_block = B
        for nblk in range(2, B + 1):
            if B % nblk == 0 and ((B // nblk) * S) % 8 == 0:
                batch_block = B // nblk
                break
    Bt = batch_block
    assert B % Bt == 0
    assert (Bt * S) % 8 == 0 or Bt == B   # keep the M block sublane-aligned
    n_blocks = B // Bt

    # Flatten batch*seq into the matmul M dimension (tall LHS for the MXU,
    # amortizes per-grid-step overhead).
    x_flat = hidden_state.reshape(B * S, E)
    # int8 mask: 4x smaller HBM stream / VMEM block than float32.
    mask_i8 = (mask != 0).astype(jnp.int8)

    # ---- explicit VMEM budget (v5e scoped default is 16 MiB; v7x physical is
    # 64 MiB).  Blocked operands are double-buffered; weights are grid-invariant.
    itemsize = jnp.dtype(hidden_state.dtype).itemsize
    blk = Bt * S * E * itemsize
    est = (4 * blk                                   # x block (2 bufs) + out block (2 bufs)
           + 2 * Bt * S * S                          # int8 mask (2 bufs)
           + 2 * (4 * E * E + 4 * E) * itemsize      # weight / bias blocks
           + 3 * blk                                 # q/k/v VMEM scratch
           + 8 * Bt * S * S * 4                      # f32 scores / exp headroom
           + 4 * Bt * S * E * 4)                     # f32 accumulator / temps
    if vmem_limit_bytes is None:
        vmem_limit_bytes = min(max(2 * est, 16 << 20), 64 << 20)

    kernel = functools.partial(_mha_kernel, num_heads=H, head_dim=D, seq_len=S)
    # Grid-invariant weight/bias blocks (constant index map -> no re-DMA).
    rep = lambda shape: pl.BlockSpec(shape, lambda b: (0,) * len(shape))

    out_flat = pl.pallas_call(
        kernel,
        out_shape=jax.ShapeDtypeStruct((B * S, E), hidden_state.dtype),
        grid_spec=pltpu.PrefetchScalarGridSpec(
            num_scalar_prefetch=0,
            grid=(n_blocks,),
            in_specs=[
                pl.BlockSpec((Bt * S, E), lambda b: (b, 0)),     # activations (flattened)
                pl.BlockSpec((Bt, S, S), lambda b: (b, 0, 0)),   # int8 mask
                rep((E, E)), rep((1, E)),                        # Wq, bq (fused heads)
                rep((E, E)), rep((1, E)),                        # Wk, bk
                rep((E, E)), rep((1, E)),                        # Wv, bv
                rep((E, E)), rep((1, E)),                        # Wo, bo
            ],
            out_specs=pl.BlockSpec((Bt * S, E), lambda b: (b, 0)),
            scratch_shapes=[pltpu.VMEM((Bt * S, E), hidden_state.dtype)] * 3,
        ),
        compiler_params=pltpu.CompilerParams(
            dimension_semantics=("parallel",),
            vmem_limit_bytes=int(vmem_limit_bytes)),
    )(x_flat, mask_i8, wq, bq, wk, bk, wv, bv, wo, bo)
    return out_flat.reshape(B, S, E)


def reference(hidden_state, mask, params, *, num_heads):
    """Pure-JAX reference mirroring the PyTorch forward (for verification)."""
    wq, bq, wk, bk, wv, bv, wo, bo = params
    E = hidden_state.shape[-1]
    D = E // num_heads
    q = hidden_state @ wq + bq[0]
    k = hidden_state @ wk + bk[0]
    v = hidden_state @ wv + bv[0]
    outs = []
    for h in range(num_heads):
        sl = slice(h * D, (h + 1) * D)
        scores = jnp.einsum('bqd,bkd->bqk', q[..., sl], k[..., sl]) / math.sqrt(D)
        scores = jnp.where(mask == 0, -jnp.inf, scores)
        w = jax.nn.softmax(scores, axis=-1)
        outs.append(jnp.einsum('bqk,bkd->bqd', w, v[..., sl]))
    x = jnp.concatenate(outs, axis=-1)
    return x @ wo + bo[0]


if __name__ == "__main__":
    # config: hidden_size=32, num_attention_heads=4 -> head_dim=8
    B, S, E, H = 2, 8, 32, 4
    D = E // H

    key = jax.random.PRNGKey(0)
    keys = jax.random.split(key, 12)

    x = jax.random.normal(keys[0], (B, S, E), dtype=jnp.float32)
    # 0/1 mask over (query, key) positions; keep at least one unmasked key per
    # query row so softmax never sees a fully-masked row (PyTorch yields NaN
    # there; the kernel yields uniform weights).
    mask = (jax.random.uniform(keys[1], (B, S, S)) > 0.3).astype(jnp.float32)
    mask = mask.at[:, :, 0].set(1.0)

    def init(k, shape, fan_in):
        bound = 1.0 / math.sqrt(fan_in)
        return jax.random.uniform(k, shape, jnp.float32, -bound, bound)

    # Per-head (E, D) Linear weights fused along output columns -> (E, H*D) = (E, E).
    wq = init(keys[2], (E, E), E); bq = init(keys[3], (1, E), E)
    wk = init(keys[4], (E, E), E); bk = init(keys[5], (1, E), E)
    wv = init(keys[6], (E, E), E); bv = init(keys[7], (1, E), E)
    wo = init(keys[8], (E, E), E); bo = init(keys[9], (1, E), E)
    params = (wq, bq, wk, bk, wv, bv, wo, bo)

    out = multi_head_attention(x, mask, params, num_heads=H)
    out = jax.block_until_ready(out)

    ref = reference(x, mask, params, num_heads=H)
    assert out.shape == (B, S, E)
    # tolerance accounts for the EUP approx-reciprocal in the softmax
    assert jnp.allclose(out, ref, atol=2e-3, rtol=2e-3), \
        float(jnp.max(jnp.abs(out - ref)))

    print("KERNEL_OK")
</pallas_src>

<mosaic_0001>
module attributes {stable_mosaic.version = 11 : i64} {
  func.func @_mha_kernel(%arg0: i32, %arg1: memref<8x32xf32, #tpu.memory_space<vmem>>, %arg2: memref<1x8x8xi8, #tpu.memory_space<vmem>>, %arg3: memref<32x32xf32, #tpu.memory_space<vmem>>, %arg4: memref<1x32xf32, #tpu.memory_space<vmem>>, %arg5: memref<32x32xf32, #tpu.memory_space<vmem>>, %arg6: memref<1x32xf32, #tpu.memory_space<vmem>>, %arg7: memref<32x32xf32, #tpu.memory_space<vmem>>, %arg8: memref<1x32xf32, #tpu.memory_space<vmem>>, %arg9: memref<32x32xf32, #tpu.memory_space<vmem>>, %arg10: memref<1x32xf32, #tpu.memory_space<vmem>>, %arg11: memref<8x32xf32, #tpu.memory_space<vmem>>, %arg12: memref<8x32xf32, #tpu.memory_space<vmem>>, %arg13: memref<8x32xf32, #tpu.memory_space<vmem>>, %arg14: memref<8x32xf32, #tpu.memory_space<vmem>>) attributes {dimension_semantics = [#tpu.dimension_semantics<parallel>], iteration_bounds = array<i64: 2>, scalar_prefetch = 0 : i64, scratch_operands = 3 : i64, tpu.core_type = #tpu.core_type<tc>, window_params = [{transform_indices = @transform_0, window_bounds = array<i64: 8, 32>}, {transform_indices = @transform_1, window_bounds = array<i64: 1, 8, 8>}, {pipeline_mode = #tpu.pipeline_mode<synchronous>, transform_indices = @transform_2, window_bounds = array<i64: 32, 32>}, {pipeline_mode = #tpu.pipeline_mode<synchronous>, transform_indices = @transform_3, window_bounds = array<i64: 1, 32>}, {pipeline_mode = #tpu.pipeline_mode<synchronous>, transform_indices = @transform_4, window_bounds = array<i64: 32, 32>}, {pipeline_mode = #tpu.pipeline_mode<synchronous>, transform_indices = @transform_5, window_bounds = array<i64: 1, 32>}, {pipeline_mode = #tpu.pipeline_mode<synchronous>, transform_indices = @transform_6, window_bounds = array<i64: 32, 32>}, {pipeline_mode = #tpu.pipeline_mode<synchronous>, transform_indices = @transform_7, window_bounds = array<i64: 1, 32>}, {pipeline_mode = #tpu.pipeline_mode<synchronous>, transform_indices = @transform_8, window_bounds = array<i64: 32, 32>}, {pipeline_mode = #tpu.pipeline_mode<synchronous>, transform_indices = @transform_9, window_bounds = array<i64: 1, 32>}, {transform_indices = @transform_10, window_bounds = array<i64: 8, 32>}]} {
    %c0 = arith.constant 0 : index
    %c0_0 = arith.constant 0 : index
    %0 = vector.load %arg1[%c0, %c0_0] : memref<8x32xf32, #tpu.memory_space<vmem>>, vector<8x32xf32>
    %c0_1 = arith.constant 0 : index
    %c0_2 = arith.constant 0 : index
    %1 = vector.load %arg3[%c0_1, %c0_2] : memref<32x32xf32, #tpu.memory_space<vmem>>, vector<32x32xf32>
    %cst = arith.constant dense<0.000000e+00> : vector<8x32xf32>
    %2 = tpu.matmul %0, %1, %cst {dimension_numbers = #tpu.dot_dimension_numbers<[1], [0], [0], [1], [0, 0, 1, 1], [], []>} : vector<8x32xf32>, vector<32x32xf32>, vector<8x32xf32> -> vector<8x32xf32>
    %c0_3 = arith.constant 0 : index
    %c0_4 = arith.constant 0 : index
    %3 = vector.load %arg4[%c0_3, %c0_4] : memref<1x32xf32, #tpu.memory_space<vmem>>, vector<1x32xf32>
    %4 = vector.broadcast %3 : vector<1x32xf32> to vector<8x32xf32>
    %5 = arith.addf %2, %4 : vector<8x32xf32>
    %cst_5 = arith.constant 0.353553385 : f32
    %6 = vector.broadcast %cst_5 : f32 to vector<8x32xf32>
    %7 = arith.mulf %5, %6 : vector<8x32xf32>
    %c0_6 = arith.constant 0 : index
    %c0_7 = arith.constant 0 : index
    %8 = vector.load %arg12[%c0_6, %c0_7] : memref<8x32xf32, #tpu.memory_space<vmem>>, vector<8x32xf32>
    tpu.vector_store %arg12[%c0_6, %c0_7], %7 {strides = array<i32>} : memref<8x32xf32, #tpu.memory_space<vmem>>, vector<8x32xf32>,
    %c0_8 = arith.constant 0 : index
    %c0_9 = arith.constant 0 : index
    %9 = vector.load %arg5[%c0_8, %c0_9] : memref<32x32xf32, #tpu.memory_space<vmem>>, vector<32x32xf32>
    %cst_10 = arith.constant dense<0.000000e+00> : vector<8x32xf32>
    %10 = tpu.matmul %0, %9, %cst_10 {dimension_numbers = #tpu.dot_dimension_numbers<[1], [0], [0], [1], [0, 0, 1, 1], [], []>} : vector<8x32xf32>, vector<32x32xf32>, vector<8x32xf32> -> vector<8x32xf32>
    %c0_11 = arith.constant 0 : index
    %c0_12 = arith.constant 0 : index
    %11 = vector.load %arg6[%c0_11, %c0_12] : memref<1x32xf32, #tpu.memory_space<vmem>>, vector<1x32xf32>
    %12 = vector.broadcast %11 : vector<1x32xf32> to vector<8x32xf32>
    %13 = arith.addf %10, %12 : vector<8x32xf32>
    %c0_13 = arith.constant 0 : index
    %c0_14 = arith.constant 0 : index
    %14 = vector.load %arg13[%c0_13, %c0_14] : memref<8x32xf32, #tpu.memory_space<vmem>>, vector<8x32xf32>
    tpu.vector_store %arg13[%c0_13, %c0_14], %13 {strides = array<i32>} : memref<8x32xf32, #tpu.memory_space<vmem>>, vector<8x32xf32>,
    %c0_15 = arith.constant 0 : index
    %c0_16 = arith.constant 0 : index
    %15 = vector.load %arg7[%c0_15, %c0_16] : memref<32x32xf32, #tpu.memory_space<vmem>>, vector<32x32xf32>
    %cst_17 = arith.constant dense<0.000000e+00> : vector<8x32xf32>
    %16 = tpu.matmul %0, %15, %cst_17 {dimension_numbers = #tpu.dot_dimension_numbers<[1], [0], [0], [1], [0, 0, 1, 1], [], []>} : vector<8x32xf32>, vector<32x32xf32>, vector<8x32xf32> -> vector<8x32xf32>
    %c0_18 = arith.constant 0 : index
    %c0_19 = arith.constant 0 : index
    %17 = vector.load %arg8[%c0_18, %c0_19] : memref<1x32xf32, #tpu.memory_space<vmem>>, vector<1x32xf32>
    %18 = vector.broadcast %17 : vector<1x32xf32> to vector<8x32xf32>
    %19 = arith.addf %16, %18 : vector<8x32xf32>
    %c0_20 = arith.constant 0 : index
    %c0_21 = arith.constant 0 : index
    %20 = vector.load %arg14[%c0_20, %c0_21] : memref<8x32xf32, #tpu.memory_space<vmem>>, vector<8x32xf32>
    tpu.vector_store %arg14[%c0_20, %c0_21], %19 {strides = array<i32>} : memref<8x32xf32, #tpu.memory_space<vmem>>, vector<8x32xf32>,
    %c0_22 = arith.constant 0 : index
    %c0_23 = arith.constant 0 : index
    %c0_24 = arith.constant 0 : index
    %21 = vector.load %arg2[%c0_22, %c0_23, %c0_24] : memref<1x8x8xi8, #tpu.memory_space<vmem>>, vector<1x8x8xi8>
    %c0_i8 = arith.constant 0 : i8
    %22 = vector.broadcast %c0_i8 : i8 to vector<1x8x8xi8>
    %23 = arith.cmpi ne, %21, %22 : vector<1x8x8xi8>
    %c0_25 = arith.constant 0 : index
    %c0_26 = arith.constant 0 : index
    %24 = vector.load %arg10[%c0_25, %c0_26] : memref<1x32xf32, #tpu.memory_space<vmem>>, vector<1x32xf32>
    %25 = vector.shape_cast %24 : vector<1x32xf32> to vector<1x32xf32>
    %26 = vector.broadcast %25 : vector<1x32xf32> to vector<8x32xf32>
    %c0_27 = arith.constant 0 : index
    %c0_28 = arith.constant 0 : index
    %27 = vector.load %arg12[%c0_27, %c0_28] : memref<8x32xf32, #tpu.memory_space<vmem>>, vector<8x8xf32>
    %28 = vector.shape_cast %27 : vector<8x8xf32> to vector<1x8x8xf32>
    %c0_29 = arith.constant 0 : index
    %c0_30 = arith.constant 0 : index
    %29 = vector.load %arg13[%c0_29, %c0_30] : memref<8x32xf32, #tpu.memory_space<vmem>>, vector<8x8xf32>
    %30 = vector.shape_cast %29 : vector<8x8xf32> to vector<1x8x8xf32>
    %c0_31 = arith.constant 0 : index
    %c0_32 = arith.constant 0 : index
    %31 = vector.load %arg14[%c0_31, %c0_32] : memref<8x32xf32, #tpu.memory_space<vmem>>, vector<8x8xf32>
    %32 = vector.shape_cast %31 : vector<8x8xf32> to vector<1x8x8xf32>
    "tpu.trace_start"() <{level = 10 : i32, message = "bqd,bkd->bqk"}> : () -> ()
    %cst_33 = arith.constant dense<0.000000e+00> : vector<1x8x8xf32>
    %33 = tpu.matmul %28, %30, %cst_33 {dimension_numbers = #tpu.dot_dimension_numbers<[2], [2], [1], [1], [0, 0, 0, 1, 1, 1], [0], [0]>} : vector<1x8x8xf32>, vector<1x8x8xf32>, vector<1x8x8xf32> -> vector<1x8x8xf32>
    %cst_34 = arith.constant -1.000000e+30 : f32
    "tpu.trace_stop"() : () -> ()
    %34 = vector.broadcast %cst_34 : f32 to vector<1x8x8xf32>
    %35 = arith.select %23, %33, %34 : vector<1x8x8xi1>, vector<1x8x8xf32>
    %cst_35 = arith.constant dense<0xFF800000> : vector<1x8xf32>
    %36 = vector.multi_reduction <maximumf>, %35, %cst_35 [2] : vector<1x8x8xf32> to vector<1x8xf32>
    %37 = vector.shape_cast %36 : vector<1x8xf32> to vector<1x8x1xf32>
    %38 = vector.broadcast %37 : vector<1x8x1xf32> to vector<1x8x8xf32>
    %39 = arith.subf %35, %38 : vector<1x8x8xf32>
    %40 = math.exp %39 : vector<1x8x8xf32>
    %cst_36 = arith.constant dense<0.000000e+00> : vector<1x8xf32>
    %41 = vector.multi_reduction <add>, %40, %cst_36 [2] : vector<1x8x8xf32> to vector<1x8xf32>
    %42 = vector.shape_cast %41 : vector<1x8xf32> to vector<1x8x1xf32>
    %43 = tpu.reciprocal %42 {approx = true} : vector<1x8x1xf32> -> vector<1x8x1xf32>
    %44 = vector.broadcast %43 : vector<1x8x1xf32> to vector<1x8x8xf32>
    %45 = arith.mulf %40, %44 : vector<1x8x8xf32>
    "tpu.trace_start"() <{level = 10 : i32, message = "bqk,bkd->bqd"}> : () -> ()
    %cst_37 = arith.constant dense<0.000000e+00> : vector<1x8x8xf32>
    %46 = tpu.matmul %45, %32, %cst_37 {dimension_numbers = #tpu.dot_dimension_numbers<[2], [1], [1], [2], [0, 0, 0, 1, 1, 2], [0], [0]>} : vector<1x8x8xf32>, vector<1x8x8xf32>, vector<1x8x8xf32> -> vector<1x8x8xf32>
    "tpu.trace_stop"() : () -> ()
    %47 = vector.shape_cast %46 : vector<1x8x8xf32> to vector<8x8xf32>
    %c0_38 = arith.constant 0 : index
    %c0_39 = arith.constant 0 : index
    %48 = vector.load %arg9[%c0_38, %c0_39] : memref<32x32xf32, #tpu.memory_space<vmem>>, vector<8x32xf32>
    %cst_40 = arith.constant dense<0.000000e+00> : vector<8x32xf32>
    %49 = tpu.matmul %47, %48, %cst_40 {dimension_numbers = #tpu.dot_dimension_numbers<[1], [0], [0], [1], [0, 0, 1, 1], [], []>} : vector<8x8xf32>, vector<8x32xf32>, vector<8x32xf32> -> vector<8x32xf32>
    %50 = arith.addf %26, %49 : vector<8x32xf32>
    %c0_41 = arith.constant 0 : index
    %c8 = arith.constant 8 : index
    %51 = vector.load %arg12[%c0_41, %c8] : memref<8x32xf32, #tpu.memory_space<vmem>>, vector<8x8xf32>
    %52 = vector.shape_cast %51 : vector<8x8xf32> to vector<1x8x8xf32>
    %c0_42 = arith.constant 0 : index
    %c8_43 = arith.constant 8 : index
    %53 = vector.load %arg13[%c0_42, %c8_43] : memref<8x32xf32, #tpu.memory_space<vmem>>, vector<8x8xf32>
    %54 = vector.shape_cast %53 : vector<8x8xf32> to vector<1x8x8xf32>
    %c0_44 = arith.constant 0 : index
    %c8_45 = arith.constant 8 : index
    %55 = vector.load %arg14[%c0_44, %c8_45] : memref<8x32xf32, #tpu.memory_space<vmem>>, vector<8x8xf32>
    %56 = vector.shape_cast %55 : vector<8x8xf32> to vector<1x8x8xf32>
    "tpu.trace_start"() <{level = 10 : i32, message = "bqd,bkd->bqk"}> : () -> ()
    %cst_46 = arith.constant dense<0.000000e+00> : vector<1x8x8xf32>
    %57 = tpu.matmul %52, %54, %cst_46 {dimension_numbers = #tpu.dot_dimension_numbers<[2], [2], [1], [1], [0, 0, 0, 1, 1, 1], [0], [0]>} : vector<1x8x8xf32>, vector<1x8x8xf32>, vector<1x8x8xf32> -> vector<1x8x8xf32>
    %cst_47 = arith.constant -1.000000e+30 : f32
    "tpu.trace_stop"() : () -> ()
    %58 = vector.broadcast %cst_47 : f32 to vector<1x8x8xf32>
    %59 = arith.select %23, %57, %58 : vector<1x8x8xi1>, vector<1x8x8xf32>
    %cst_48 = arith.constant dense<0xFF800000> : vector<1x8xf32>
    %60 = vector.multi_reduction <maximumf>, %59, %cst_48 [2] : vector<1x8x8xf32> to vector<1x8xf32>
    %61 = vector.shape_cast %60 : vector<1x8xf32> to vector<1x8x1xf32>
    %62 = vector.broadcast %61 : vector<1x8x1xf32> to vector<1x8x8xf32>
    %63 = arith.subf %59, %62 : vector<1x8x8xf32>
    %64 = math.exp %63 : vector<1x8x8xf32>
    %cst_49 = arith.constant dense<0.000000e+00> : vector<1x8xf32>
    %65 = vector.multi_reduction <add>, %64, %cst_49 [2] : vector<1x8x8xf32> to vector<1x8xf32>
    %66 = vector.shape_cast %65 : vector<1x8xf32> to vector<1x8x1xf32>
    %67 = tpu.reciprocal %66 {approx = true} : vector<1x8x1xf32> -> vector<1x8x1xf32>
    %68 = vector.broadcast %67 : vector<1x8x1xf32> to vector<1x8x8xf32>
    %69 = arith.mulf %64, %68 : vector<1x8x8xf32>
    "tpu.trace_start"() <{level = 10 : i32, message = "bqk,bkd->bqd"}> : () -> ()
    %cst_50 = arith.constant dense<0.000000e+00> : vector<1x8x8xf32>
    %70 = tpu.matmul %69, %56, %cst_50 {dimension_numbers = #tpu.dot_dimension_numbers<[2], [1], [1], [2], [0, 0, 0, 1, 1, 2], [0], [0]>} : vector<1x8x8xf32>, vector<1x8x8xf32>, vector<1x8x8xf32> -> vector<1x8x8xf32>
    "tpu.trace_stop"() : () -> ()
    %71 = vector.shape_cast %70 : vector<1x8x8xf32> to vector<8x8xf32>
    %c8_51 = arith.constant 8 : index
    %c0_52 = arith.constant 0 : index
    %72 = vector.load %arg9[%c8_51, %c0_52] : memref<32x32xf32, #tpu.memory_space<vmem>>, vector<8x32xf32>
    %cst_53 = arith.constant dense<0.000000e+00> : vector<8x32xf32>
    %73 = tpu.matmul %71, %72, %cst_53 {dimension_numbers = #tpu.dot_dimension_numbers<[1], [0], [0], [1], [0, 0, 1, 1], [], []>} : vector<8x8xf32>, vector<8x32xf32>, vector<8x32xf32> -> vector<8x32xf32>
    %74 = arith.addf %50, %73 : vector<8x32xf32>
    %c0_54 = arith.constant 0 : index
    %c16 = arith.constant 16 : index
    %75 = vector.load %arg12[%c0_54, %c16] : memref<8x32xf32, #tpu.memory_space<vmem>>, vector<8x8xf32>
    %76 = vector.shape_cast %75 : vector<8x8xf32> to vector<1x8x8xf32>
    %c0_55 = arith.constant 0 : index
    %c16_56 = arith.constant 16 : index
    %77 = vector.load %arg13[%c0_55, %c16_56] : memref<8x32xf32, #tpu.memory_space<vmem>>, vector<8x8xf32>
    %78 = vector.shape_cast %77 : vector<8x8xf32> to vector<1x8x8xf32>
    %c0_57 = arith.constant 0 : index
    %c16_58 = arith.constant 16 : index
    %79 = vector.load %arg14[%c0_57, %c16_58] : memref<8x32xf32, #tpu.memory_space<vmem>>, vector<8x8xf32>
    %80 = vector.shape_cast %79 : vector<8x8xf32> to vector<1x8x8xf32>
    "tpu.trace_start"() <{level = 10 : i32, message = "bqd,bkd->bqk"}> : () -> ()
    %cst_59 = arith.constant dense<0.000000e+00> : vector<1x8x8xf32>
    %81 = tpu.matmul %76, %78, %cst_59 {dimension_numbers = #tpu.dot_dimension_numbers<[2], [2], [1], [1], [0, 0, 0, 1, 1, 1], [0], [0]>} : vector<1x8x8xf32>, vector<1x8x8xf32>, vector<1x8x8xf32> -> vector<1x8x8xf32>
    %cst_60 = arith.constant -1.000000e+30 : f32
    "tpu.trace_stop"() : () -> ()
    %82 = vector.broadcast %cst_60 : f32 to vector<1x8x8xf32>
    %83 = arith.select %23, %81, %82 : vector<1x8x8xi1>, vector<1x8x8xf32>
    %cst_61 = arith.constant dense<0xFF800000> : vector<1x8xf32>
    %84 = vector.multi_reduction <maximumf>, %83, %cst_61 [2] : vector<1x8x8xf32> to vector<1x8xf32>
    %85 = vector.shape_cast %84 : vector<1x8xf32> to vector<1x8x1xf32>
    %86 = vector.broadcast %85 : vector<1x8x1xf32> to vector<1x8x8xf32>
    %87 = arith.subf %83, %86 : vector<1x8x8xf32>
    %88 = math.exp %87 : vector<1x8x8xf32>
    %cst_62 = arith.constant dense<0.000000e+00> : vector<1x8xf32>
    %89 = vector.multi_reduction <add>, %88, %cst_62 [2] : vector<1x8x8xf32> to vector<1x8xf32>
    %90 = vector.shape_cast %89 : vector<1x8xf32> to vector<1x8x1xf32>
    %91 = tpu.reciprocal %90 {approx = true} : vector<1x8x1xf32> -> vector<1x8x1xf32>
    %92 = vector.broadcast %91 : vector<1x8x1xf32> to vector<1x8x8xf32>
    %93 = arith.mulf %88, %92 : vector<1x8x8xf32>
    "tpu.trace_start"() <{level = 10 : i32, message = "bqk,bkd->bqd"}> : () -> ()
    %cst_63 = arith.constant dense<0.000000e+00> : vector<1x8x8xf32>
    %94 = tpu.matmul %93, %80, %cst_63 {dimension_numbers = #tpu.dot_dimension_numbers<[2], [1], [1], [2], [0, 0, 0, 1, 1, 2], [0], [0]>} : vector<1x8x8xf32>, vector<1x8x8xf32>, vector<1x8x8xf32> -> vector<1x8x8xf32>
    "tpu.trace_stop"() : () -> ()
    %95 = vector.shape_cast %94 : vector<1x8x8xf32> to vector<8x8xf32>
    %c16_64 = arith.constant 16 : index
    %c0_65 = arith.constant 0 : index
    %96 = vector.load %arg9[%c16_64, %c0_65] : memref<32x32xf32, #tpu.memory_space<vmem>>, vector<8x32xf32>
    %cst_66 = arith.constant dense<0.000000e+00> : vector<8x32xf32>
    %97 = tpu.matmul %95, %96, %cst_66 {dimension_numbers = #tpu.dot_dimension_numbers<[1], [0], [0], [1], [0, 0, 1, 1], [], []>} : vector<8x8xf32>, vector<8x32xf32>, vector<8x32xf32> -> vector<8x32xf32>
    %98 = arith.addf %74, %97 : vector<8x32xf32>
    %c0_67 = arith.constant 0 : index
    %c24 = arith.constant 24 : index
    %99 = vector.load %arg12[%c0_67, %c24] : memref<8x32xf32, #tpu.memory_space<vmem>>, vector<8x8xf32>
    %100 = vector.shape_cast %99 : vector<8x8xf32> to vector<1x8x8xf32>
    %c0_68 = arith.constant 0 : index
    %c24_69 = arith.constant 24 : index
    %101 = vector.load %arg13[%c0_68, %c24_69] : memref<8x32xf32, #tpu.memory_space<vmem>>, vector<8x8xf32>
    %102 = vector.shape_cast %101 : vector<8x8xf32> to vector<1x8x8xf32>
    %c0_70 = arith.constant 0 : index
    %c24_71 = arith.constant 24 : index
    %103 = vector.load %arg14[%c0_70, %c24_71] : memref<8x32xf32, #tpu.memory_space<vmem>>, vector<8x8xf32>
    %104 = vector.shape_cast %103 : vector<8x8xf32> to vector<1x8x8xf32>
    "tpu.trace_start"() <{level = 10 : i32, message = "bqd,bkd->bqk"}> : () -> ()
    %cst_72 = arith.constant dense<0.000000e+00> : vector<1x8x8xf32>
    %105 = tpu.matmul %100, %102, %cst_72 {dimension_numbers = #tpu.dot_dimension_numbers<[2], [2], [1], [1], [0, 0, 0, 1, 1, 1], [0], [0]>} : vector<1x8x8xf32>, vector<1x8x8xf32>, vector<1x8x8xf32> -> vector<1x8x8xf32>
    %cst_73 = arith.constant -1.000000e+30 : f32
    "tpu.trace_stop"() : () -> ()
    %106 = vector.broadcast %cst_73 : f32 to vector<1x8x8xf32>
    %107 = arith.select %23, %105, %106 : vector<1x8x8xi1>, vector<1x8x8xf32>
    %cst_74 = arith.constant dense<0xFF800000> : vector<1x8xf32>
    %108 = vector.multi_reduction <maximumf>, %107, %cst_74 [2] : vector<1x8x8xf32> to vector<1x8xf32>
    %109 = vector.shape_cast %108 : vector<1x8xf32> to vector<1x8x1xf32>
    %110 = vector.broadcast %109 : vector<1x8x1xf32> to vector<1x8x8xf32>
    %111 = arith.subf %107, %110 : vector<1x8x8xf32>
    %112 = math.exp %111 : vector<1x8x8xf32>
    %cst_75 = arith.constant dense<0.000000e+00> : vector<1x8xf32>
    %113 = vector.multi_reduction <add>, %112, %cst_75 [2] : vector<1x8x8xf32> to vector<1x8xf32>
    %114 = vector.shape_cast %113 : vector<1x8xf32> to vector<1x8x1xf32>
    %115 = tpu.reciprocal %114 {approx = true} : vector<1x8x1xf32> -> vector<1x8x1xf32>
    %116 = vector.broadcast %115 : vector<1x8x1xf32> to vector<1x8x8xf32>
    %117 = arith.mulf %112, %116 : vector<1x8x8xf32>
    "tpu.trace_start"() <{level = 10 : i32, message = "bqk,bkd->bqd"}> : () -> ()
    %cst_76 = arith.constant dense<0.000000e+00> : vector<1x8x8xf32>
    %118 = tpu.matmul %117, %104, %cst_76 {dimension_numbers = #tpu.dot_dimension_numbers<[2], [1], [1], [2], [0, 0, 0, 1, 1, 2], [0], [0]>} : vector<1x8x8xf32>, vector<1x8x8xf32>, vector<1x8x8xf32> -> vector<1x8x8xf32>
    "tpu.trace_stop"() : () -> ()
    %119 = vector.shape_cast %118 : vector<1x8x8xf32> to vector<8x8xf32>
    %c24_77 = arith.constant 24 : index
    %c0_78 = arith.constant 0 : index
    %120 = vector.load %arg9[%c24_77, %c0_78] : memref<32x32xf32, #tpu.memory_space<vmem>>, vector<8x32xf32>
    %cst_79 = arith.constant dense<0.000000e+00> : vector<8x32xf32>
    %121 = tpu.matmul %119, %120, %cst_79 {dimension_numbers = #tpu.dot_dimension_numbers<[1], [0], [0], [1], [0, 0, 1, 1], [], []>} : vector<8x8xf32>, vector<8x32xf32>, vector<8x32xf32> -> vector<8x32xf32>
    %122 = arith.addf %98, %121 : vector<8x32xf32>
    %c0_80 = arith.constant 0 : index
    %c0_81 = arith.constant 0 : index
    %123 = vector.load %arg11[%c0_80, %c0_81] : memref<8x32xf32, #tpu.memory_space<vmem>>, vector<8x32xf32>
    tpu.vector_store %arg11[%c0_80, %c0_81], %122 {strides = array<i32>} : memref<8x32xf32, #tpu.memory_space<vmem>>, vector<8x32xf32>,
    return
  }
  func.func @transform_0(%arg0: i32) -> (i32, i32) {
    %c0_i32 = arith.constant 0 : i32
    %c0_i32_0 = arith.constant 0 : i32
    return %arg0, %c0_i32 : i32, i32
  }
  func.func @transform_1(%arg0: i32) -> (i32, i32, i32) {
    %c0_i32 = arith.constant 0 : i32
    %c0_i32_0 = arith.constant 0 : i32
    %c0_i32_1 = arith.constant 0 : i32
    return %arg0, %c0_i32, %c0_i32_0 : i32, i32, i32
  }
  func.func @transform_2(%arg0: i32) -> (i32, i32) {
    %c0_i32 = arith.constant 0 : i32
    %c0_i32_0 = arith.constant 0 : i32
    %c0_i32_1 = arith.constant 0 : i32
    return %c0_i32, %c0_i32_0 : i32, i32
  }
  func.func @transform_3(%arg0: i32) -> (i32, i32) {
    %c0_i32 = arith.constant 0 : i32
    %c0_i32_0 = arith.constant 0 : i32
    %c0_i32_1 = arith.constant 0 : i32
    return %c0_i32, %c0_i32_0 : i32, i32
  }
  func.func @transform_4(%arg0: i32) -> (i32, i32) {
    %c0_i32 = arith.constant 0 : i32
    %c0_i32_0 = arith.constant 0 : i32
    %c0_i32_1 = arith.constant 0 : i32
    return %c0_i32, %c0_i32_0 : i32, i32
  }
  func.func @transform_5(%arg0: i32) -> (i32, i32) {
    %c0_i32 = arith.constant 0 : i32
    %c0_i32_0 = arith.constant 0 : i32
    %c0_i32_1 = arith.constant 0 : i32
    return %c0_i32, %c0_i32_0 : i32, i32
  }
  func.func @transform_6(%arg0: i32) -> (i32, i32) {
    %c0_i32 = arith.constant 0 : i32
    %c0_i32_0 = arith.constant 0 : i32
    %c0_i32_1 = arith.constant 0 : i32
    return %c0_i32, %c0_i32_0 : i32, i32
  }
  func.func @transform_7(%arg0: i32) -> (i32, i32) {
    %c0_i32 = arith.constant 0 : i32
    %c0_i32_0 = arith.constant 0 : i32
    %c0_i32_1 = arith.constant 0 : i32
    return %c0_i32, %c0_i32_0 : i32, i32
  }
  func.func @transform_8(%arg0: i32) -> (i32, i32) {
    %c0_i32 = arith.constant 0 : i32
    %c0_i32_0 = arith.constant 0 : i32
    %c0_i32_1 = arith.constant 0 : i32
    return %c0_i32, %c0_i32_0 : i32, i32
  }
  func.func @transform_9(%arg0: i32) -> (i32, i32) {
    %c0_i32 = arith.constant 0 : i32
    %c0_i32_0 = arith.constant 0 : i32
    %c0_i32_1 = arith.constant 0 : i32
    return %c0_i32, %c0_i32_0 : i32, i32
  }
  func.func @transform_10(%arg0: i32) -> (i32, i32) {
    %c0_i32 = arith.constant 0 : i32
    %c0_i32_0 = arith.constant 0 : i32
    return %arg0, %c0_i32 : i32, i32
  }
}

</mosaic_0001>

<bundles_post_ra>
// kernel: tpu_custom_call.1
= control target key start
LH: loop header
LB: loop body
LE: loop exit
PB: predicated region body
PF: predicated region fallthrough
CT: control target
= control target key end

     0   :  { %s2889_s0 = inlined_call_operand.hbm [shape: f32[16,32], index: 0, kind: input, shape index: {}]   ;;  %s2890_s1 = inlined_call_operand.hbm [shape: s8[2,8,8], index: 1, kind: input, shape index: {}]   ;;  %s2891_s2 = inlined_call_operand.hbm [shape: f32[32,32], index: 2, kind: input, shape index: {}]   ;;  %s2892_s3 = inlined_call_operand.vmem [shape: f32[1,32], index: 3, kind: input, shape index: {}]   ;;  %s2893_s4 = inlined_call_operand.hbm [shape: f32[32,32], index: 4, kind: input, shape index: {}]   ;;  %s2894_s5 = inlined_call_operand.vmem [shape: f32[1,32], index: 5, kind: input, shape index: {}]   ;;  %s2895_s6 = inlined_call_operand.hbm [shape: f32[32,32], index: 6, kind: input, shape index: {}]   ;;  %s2896_s7 = inlined_call_operand.vmem [shape: f32[1,32], index: 7, kind: input, shape index: {}]   ;;  %s2897_s8 = inlined_call_operand.hbm [shape: f32[32,32], index: 8, kind: input, shape index: {}]   ;;  %s2898_s9 = inlined_call_operand.vmem [shape: f32[1,32], index: 9, kind: input, shape index: {}]   ;;  %s2899_s10 = inlined_call_operand.hbm [shape: f32[16,32], index: 10, kind: output, shape index: {}]  }
   0x1   :  { %2904 = sst [smem:[#allocation24_spill]] %s2889_s0 }
   0x2   :  { %2905 = sst [smem:[#allocation25_spill]] %s2891_s2 }
   0x3   :  { %2906 = sst [smem:[#allocation26_spill]] %s2893_s4 }
   0x4   :  { %2907 = sst [smem:[#allocation27_spill]] %s2895_s6 }
   0x5   :  { %2908 = sst [smem:[#allocation28_spill]] %s2897_s8 }
   0x6   :  { %15 = vsyncpa [#allocation6], 0 }
   0x7   :  { %17 = vsyncpa [#allocation6 + $0x1], 0 }
   0x8   :  { %18 = vsyncpa [#allocation9], 0 }
   0x9   :  { %20 = vsyncpa [#allocation9 + $0x1], 0 }
   0xa   :  { %21 = vsyncpa [#allocation12], 0 }
   0xb   :  { %22 = vsyncpa [#allocation15], 0 }
   0xc   :  { %23 = vsyncpa [#allocation7], 0 }
   0xd   :  { %25 = vsyncpa [#allocation7 + $0x1], 0  ;;  %s2469_s13 = smov 0   ;;  %s2471_s14 = smov 0  }
   0xe   :  { %s2473_s15 = smov 0   ;;  %s2475_s16 = smov 0  }
   0xf LB: > { %s2399_s17 = smov [#allocation10]   ;;  %s2490_s19 = sadd.s32 4294967295, %s2397_s16   ;;  %s2397_s16 = sphi %s2475_s16, %s2941_s16   ;;  %s2393_s15 = sphi %s2473_s15, %s2940_s15   ;;  %s2389_s14 = sphi %s2471_s14, %s2939_s14   ;;  %s2385_s13 = sphi %s2469_s13, %s2938_s13  }
  0x10   : > { %s294_s18 = sshll.u32 %s2399_s17, 4  ;;  %p1864_p0 = scmp.ge.s32.totalorder %s2397_s16, 1  ;;  %s295_s18 = int_to_ptr.vmem [resolvable:$true] %s294_s18 }
  0x11   : > { %p2900_p1 = scmp.eq.s32.totalorder %s2490_s19, 0  ;;  %p282_p2 = scmp.lt.s32.totalorder %s2397_s16, 3 }
  0x12   : > { %s2400_s21 = smov [#allocation11]   ;;  %s2401_s24 = smov [#allocation13]  }
  0x13   : > { %p2495_p3 = pnand %p1864_p0, %p282_p2  ;;  %s310_s22 = sshll.u32 %s2400_s21, 4  ;;  %s2508_s22 = int_to_ptr.vmem [resolvable:$true] %s310_s22 }
  0x14   : > { %s326_s25 = sshll.u32 %s2401_s24, 4  ;;  %s2168_s26 = scalar_lea.vmem %s295_s18, 512  ;;  %s2510_s25 = int_to_ptr.vmem [resolvable:$true] %s326_s25 }
  0x15   : > { %s2909_s20 = scalar_select %p2495_p3, 1, 0 }
  0x16   : > { %p2063_p5 = pneg %p2495_p3  ;;  %p2169_p8 = scmp.ne.s32.totalorder %s295_s18, %s2168_s26 }
  0x17   : > { %p2176_p11 = scmp.lt.s32.totalorder %s295_s18, %s295_s18  ;;  %p2177_p12 = scmp.lt.s32.totalorder %s2168_s26, %s2168_s26 }
  0x18   : > { %p2504_p6 = pnand %p2063_p5, %p2900_p1 }
  0x19   : > { %p2178_p13 = por %p2177_p12, %p2176_p11 }
  0x1a   : > { %p2159_p7 = pneg %p2504_p6 }
  0x1c   : > { %p2171_p9 = pnand %p2169_p8, %p2159_p7 }
  0x1e   : > { %p2172_p10 = pneg %p2171_p9 }
  0x20   : > { %p2179_p0 = pnand %p2178_p13, %p2172_p10 }
  0x22   : > { %2182 = shalt.err (!%p2179_p0)
}
  0x23   : > { %s2402_s27 = smov 128   ;;  %s2403_s28 = smov 8  }
  0x24   : > { %s2911_s2 = sld [smem:[#allocation25_spill]]  ;;  %s2194_s11 = scalar_lea.vmem %s2508_s22, 512 }
  0x25   : > { %p2195_p2 = scmp.ne.s32.totalorder %s2508_s22, %s2194_s11  ;;  %p2202_p9 = scmp.lt.s32.totalorder %s2508_s22, %s2508_s22 }
  0x26   : > { %p2203_p10 = scmp.lt.s32.totalorder %s2194_s11, %s2194_s11 }
  0x27   : > { %p2197_p5 = pnand %p2195_p2, %p2159_p7 }
  0x28   : > { %p2204_p11 = por %p2203_p10, %p2202_p9 }
  0x29   : > { %p2198_p8 = pneg %p2197_p5 }
  0x2a   : > { %2066 = dma.hbm_to_vmem [thread:$0]  (!%p2504_p6), %s2911_s2, 512, %s295_s18, [#allocation9], %s2402_s27, %s2402_s27, %s2403_s28  }
  0x2b   : > { %p2205_p12 = pnand %p2204_p11, %p2198_p8 }
  0x2d   : > { %2208 = shalt.err (!%p2205_p12)
}
  0x2e   : > { %s2912_s4 = sld [smem:[#allocation26_spill]]  ;;  %s2220_s18 = scalar_lea.vmem %s2510_s25, 512 }
  0x2f   : > { %p2221_p13 = scmp.ne.s32.totalorder %s2510_s25, %s2220_s18  ;;  %p2228_p5 = scmp.lt.s32.totalorder %s2510_s25, %s2510_s25 }
  0x30   : > { %p2229_p8 = scmp.lt.s32.totalorder %s2220_s18, %s2220_s18 }
  0x31   : > { %p2223_p0 = pnand %p2221_p13, %p2159_p7 }
  0x32   : > { %p2230_p9 = por %p2229_p8, %p2228_p5 }
  0x33   : > { %p2224_p2 = pneg %p2223_p0 }
  0x34   : > { %2069 = dma.hbm_to_vmem [thread:$0]  (!%p2504_p6), %s2912_s4, 512, %s2508_s22, [#allocation12], %s2402_s27, %s2402_s27, %s2403_s28  }
  0x35   : > { %p2231_p10 = pnand %p2230_p9, %p2224_p2 }
  0x37   : > { %2234 = shalt.err (!%p2231_p10)
}
  0x38   : > { %s2913_s6 = sld [smem:[#allocation27_spill]]  ;;  %s2404_s24 = smov [#allocation14]  }
  0x39   : > { %s342_s26 = sshll.u32 %s2404_s24, 4  ;;  %s343_s26 = int_to_ptr.vmem [resolvable:$true] %s342_s26 }
  0x3a   : > { %s2246_s29 = scalar_lea.vmem %s343_s26, 512  ;;  %p2254_p0 = scmp.lt.s32.totalorder %s343_s26, %s343_s26 }
  0x3b   : > { %p2247_p11 = scmp.ne.s32.totalorder %s343_s26, %s2246_s29  ;;  %p2255_p2 = scmp.lt.s32.totalorder %s2246_s29, %s2246_s29 }
  0x3d   : > { %p2249_p12 = pnand %p2247_p11, %p2159_p7  ;;  %p2256_p5 = por %p2255_p2, %p2254_p0 }
  0x3e   : > { %2072 = dma.hbm_to_vmem [thread:$0]  (!%p2504_p6), %s2913_s6, 512, %s2510_s25, [#allocation12], %s2402_s27, %s2402_s27, %s2403_s28  }
  0x3f   : > { %p2250_p13 = pneg %p2249_p12 }
  0x41   : > { %p2257_p8 = pnand %p2256_p5, %p2250_p13 }
  0x43   : > { %2260 = shalt.err (!%p2257_p8)
}
  0x44   : > { %s2914_s8 = sld [smem:[#allocation28_spill]]  ;;  %s1863_s23 = sadd.s32 4294967294, %s2397_s16  }
  0x45   : > { %s2570_s11 = sadd.s32 1, %s2397_s16   ;;  %s38_s17 = sadd.s32 1, %s2393_s15 }
  0x46   : > { %s35_s12 = ssub.s32 %s2397_s16, %s2570_s11  ;;  %p45_p9 = scmp.ne.s32.totalorder %s2393_s15, %s2389_s14 }
  0x47   : > { %p36_p7 = scmp.eq.s32.totalorder %s35_s12, 0  ;;  %p46_p10 = scmp.eq.s32.totalorder %s2397_s16, 0 }
  0x48   : > { %p51_p11 = scmp.ne.s32.totalorder %s2389_s14, %s2385_s13  ;;  %p269_p13 = scmp.eq.s32.totalorder %s2490_s19, 1 }
  0x49   : > { %s2581_s18 = scalar_select %p36_p7, %s2393_s15, %s38_s17  }
  0x4a   : > { %2075 = dma.hbm_to_vmem [thread:$0]  (!%p2504_p6), %s2914_s8, 512, %s343_s26, [#allocation15], %s2402_s27, %s2402_s27, %s2403_s28  }
  0x4b   : > { %2915 = sst [smem:[#allocation23_spill]] %s2581_s18  ;;  %p2583_p12 = por %p46_p10, %p45_p9 }
  0x4c   : > { %p2589_p6 = por %p2900_p1, %p51_p11  ;;  %p275_p0 = scmp.eq.s32.totalorder %s1863_s23, 1 }
  0x4d   : > { %p2091_p2 = scmp.lt.s32.totalorder %s2397_s16, 2  ;;  %s2596_s28 = sand.u32 1, %s2393_s15  }
  0x4e   : > { %s2917_s27 = scalar_select %p2589_p6, 1, 0 }
  0x4f   : > { %p2598_p5 = por %p269_p13, %p45_p9  ;;  %p2602_p8 = por %p275_p0, %p51_p11 }
  0x50   : > { %s1870_s26 = sshll.u32 %s2596_s28, 3  ;;  %s1871_s29 = sshll.u32 %s2397_s16, 7 }
  0x51   : > { %s2918_s22 = scalar_select %p2598_p5, 1, 0 }
  0x52   : > { %s2919_s24 = scalar_select %p2602_p8, 1, 0 }
  0x53   : > { %s2920_s0 = sld [smem:[#allocation24_spill]]  ;;  %s363_s12 = scalar_lea.vmem [#allocation5], %s1870_s26 }
  0x54   : > { %s370_s17 = sshll.u32 %s363_s12, 4  ;;  %p2617_p7 = pnand %p2091_p2, %p2583_p12  ;;  %s2613_s17 = int_to_ptr.vmem [resolvable:$true] %s370_s17 }
  0x55   : > { %s360_s8 = scalar_lea.sflag [#allocation6], %s2596_s28 }
  0x56   : > { %p2263_p10 = pneg %p2617_p7 }
  0x59   : > { %s2611_s23 = scalar_lea.hbm %s2920_s0, %s1871_s29  ;;  %s2266_s21 = scalar_lea.hbm %s2920_s0, 256 }
  0x5a   : > { %s2261_s25 = scalar_lea.hbm %s2611_s23, 128  ;;  %p2267_p12 = scmp.lt.s32.totalorder %s2611_s23, %s2920_s0 }
  0x5b   : > { %p2262_p9 = scmp.ne.s32.totalorder %s2611_s23, %s2261_s25  ;;  %p2268_p0 = scmp.lt.s32.totalorder %s2266_s21, %s2261_s25 }
  0x5d   : > { %p2264_p11 = pnand %p2263_p10, %p2262_p9  ;;  %p2269_p2 = por %p2268_p0, %p2267_p12 }
  0x5f   : > { %p2265_p13 = pneg %p2264_p11 }
  0x61   : > { %p2270_p4 = pnand %p2269_p2, %p2265_p13 }
  0x63   : > { %2273 = shalt.err (!%p2270_p4)
}
  0x64   : > { %s2274_s4 = scalar_lea.vmem %s2613_s17, 128  ;;  %s2405_s26 = smov [#allocation5]  }
  0x65   : > { %p2275_p1 = scmp.ne.s32.totalorder %s2613_s17, %s2274_s4  ;;  %s2279_s29 = sshll.u32 %s2405_s26, 4  ;;  %s2280_s29 = int_to_ptr.vmem [resolvable:$false] %s2279_s29 }
  0x66   : > { %s2281_s6 = scalar_lea.vmem %s2280_s29, 256  ;;  %p2282_p8 = scmp.lt.s32.totalorder %s2613_s17, %s2280_s29 }
  0x67   : > { %p2277_p9 = pnand %p2275_p1, %p2263_p10  ;;  %p2283_p5 = scmp.lt.s32.totalorder %s2281_s6, %s2274_s4 }
  0x69   : > { %p2278_p11 = pneg %p2277_p9  ;;  %p2284_p6 = por %p2283_p5, %p2282_p8 }
  0x6b   : > { %p2285_p12 = pnand %p2284_p6, %p2278_p11 }
  0x6d   : > { %2288 = shalt.err (!%p2285_p12)
}
  0x6e   : > { %2079 = dma.hbm_to_vmem [thread:$0]  (!%p2617_p7), %s2611_s23, 128, %s2613_s17, %s360_s8  }
  0x6f   : > { %s1873_s25 = sshll.u32 %s2397_s16, 5  ;;  %s2922_s26 = sshll.u32 %s2596_s28, 1 }
  0x70   : > { %s2652_s12 = scalar_lea.hbm %s2890_s1, %s1873_s25  ;;  %s381_s4 = scalar_lea.vmem [#allocation8], %s2922_s26 }
  0x71   : > { %s388_s6 = sshll.u32 %s381_s4, 4  ;;  %s2923_s29 = sand.u32 1, %s2397_s16   ;;  %s389_s6 = int_to_ptr.vmem [resolvable:$true] %s388_s6 }
  0x72   : > { %s378_s0 = scalar_lea.sflag [#allocation9], %s2923_s29  ;;  %s2289_s18 = scalar_lea.hbm %s2652_s12, 32 }
  0x73   : > { %p2290_p1 = scmp.ne.s32.totalorder %s2652_s12, %s2289_s18  ;;  %s2294_s17 = scalar_lea.hbm %s2890_s1, 64 }
  0x74   : > { %p2295_p5 = scmp.lt.s32.totalorder %s2652_s12, %s2890_s1  ;;  %p2296_p8 = scmp.lt.s32.totalorder %s2294_s17, %s2289_s18 }
  0x75   : > { %p2292_p4 = pnand %p2290_p1, %p2263_p10 }
  0x76   : > { %p2297_p13 = por %p2296_p8, %p2295_p5 }
  0x77   : > { %p2293_p6 = pneg %p2292_p4 }
  0x79   : > { %p2298_p0 = pnand %p2297_p13, %p2293_p6 }
  0x7b   : > { %2301 = shalt.err (!%p2298_p0)
}
  0x7c   : > { %s2302_s21 = scalar_lea.vmem %s389_s6, 32  ;;  %s2406_s30 = smov [#allocation8]  }
  0x7d   : > { %p2303_p2 = scmp.ne.s32.totalorder %s389_s6, %s2302_s21  ;;  %s2307_s26 = sshll.u32 %s2406_s30, 4  ;;  %s2308_s26 = int_to_ptr.vmem [resolvable:$false] %s2307_s26 }
  0x7e   : > { %s2309_s4 = scalar_lea.vmem %s2308_s26, 64  ;;  %p2310_p12 = scmp.lt.s32.totalorder %s389_s6, %s2308_s26 }
  0x7f   : > { %p2305_p9 = pnand %p2303_p2, %p2263_p10  ;;  %p2311_p1 = scmp.lt.s32.totalorder %s2309_s4, %s2302_s21 }
  0x81   : > { %p2306_p11 = pneg %p2305_p9  ;;  %p2312_p4 = por %p2311_p1, %p2310_p12 }
  0x83   : > { %p2313_p3 = pnand %p2312_p4, %p2306_p11 }
  0x85   : > { %2316 = shalt.err (!%p2313_p3)
}
  0x86   : > { %2082 = dma.hbm_to_vmem [thread:$0]  (!%p2617_p7), %s2652_s12, 32, %s389_s6, %s378_s0  }
  0x87   : > { %p2924_p6 = scmp.ne.s32.totalorder %s2909_s20, 0 }
  0x88   : > { %s2679_s18 = sand.u32 (!%p2924_p6), 1, %s2389_s14   ;;  %p2925_p3 = scmp.ne.s32.totalorder (!%p2924_p6), %s2917_s27, 0 }
  0x89   : > { %397 = sbr.rel (%p2924_p6) target bundleno = 2808 (0xaf8), region = 60  ;;  %s1875_s29 = sshll.u32 (!%p2924_p6), %s2679_s18, 3 }
  0x8a   : > { %s400_s8 = scalar_lea.sflag (!%p2924_p6), [#allocation6], %s2679_s18  ;;  %s2685_s23 = scalar_lea.vmem (!%p2924_p6), [#allocation5], %s1875_s29 }
  0x8e   : > { %2360 = dma.done.wait (%p2925_p3), %s400_s8, 128  }
  0x8f   : > { %2362 = vsyncadd (%p2925_p3), %s400_s8, 4294967168  ;;  %s408_s0 = sand.u32 1, %s2490_s19   ;;  %s1876_s2 = sshll.u32 %s2679_s18, 1 }
  0x90   : > { %s409_s20 = scalar_lea.sflag [#allocation9], %s408_s0  ;;  %s2693_s12 = scalar_lea.vmem [#allocation8], %s1876_s2 }
  0x91   : > { %2364 = dma.done.wait (%p2925_p3), %s409_s20, 32  }
  0x92   : > { %2366 = vsyncadd (%p2925_p3), %s409_s20, 4294967264  ;;  %p2926_p7 = scmp.eq.s32.totalorder %s2490_s19, 0 }
  0x94   : > { %2368 = dma.done.wait (%p2926_p7), [#allocation9], 512   ;;  %p2927_p10 = pmov %p2926_p7 }
  0x95   : > { %p2928_p5 = pmov %p2926_p7 }
  0x96   : > { %2370 = vsyncadd (%p2927_p10), [#allocation9], 4294966784 }
  0x97   : > { %2372 = dma.done.wait (%p2928_p5), [#allocation12], 1024   ;;  %p2929_p8 = pmov %p2928_p5 }
  0x98   : > { %p2930_p13 = pmov %p2928_p5 }
  0x99   : > { %2374 = vsyncadd (%p2929_p8), [#allocation12], 4294966272 }
  0x9a   : > { %2376 = dma.done.wait (%p2930_p13), [#allocation15], 512   ;;  %p2931_p0 = pmov %p2928_p5 }
  0x9b   : > { %v2407_v0 = vmov 0.0   ;;  %vm2408_vm0 = vmmov 0   ;;  %v476_v1 = vld [vmem:[#allocation10 + $0x18] sm:$0xff]  ;;  %v475_v3 = vld [vmem:[#allocation10 + $0x10] sm:$0xff]  ;;  %v474_v5 = vld [vmem:[#allocation10 + $0x8] sm:$0xff]  ;;  %vm484_vm1 = vcmask 261120  }
  0x9c   : > { %2378 = vsyncadd (%p2931_p0), [#allocation15], 4294966784  ;;  %1948 = vmatprep.subr.mxu0 %v2407_v0  ;;  %1959 = vmatprep.subr.mxu1 %v2407_v0  ;;  %v563_v2 = vld [vmem:[#allocation11 + $0x18] sm:$0xff]  ;;  %v562_v4 = vld [vmem:[#allocation11 + $0x10] sm:$0xff]  ;;  %vm736_vm2 = vcmask 64512   ;;  %s2409_s28 = smov 120  }
  0x9d   : > { %1956 = vmatprep.mubr.msk.f32.mxu0 %vm2408_vm0, %v2407_v0  ;;  %1967 = vmatprep.mubr.msk.f32.mxu1 %vm2408_vm0, %v2407_v0  ;;  %v561_v6 = vld [vmem:[#allocation11 + $0x8] sm:$0xff]  ;;  %v473_v7 = vld [vmem:[#allocation10] sm:$0xff]  ;;  %v1882_v10 = vld [vmem:[%s2892_s3] ss:$0 sm:$0xff]  ;;  %v2410_v26 = vmov 0   ;;  %s2411_s26 = smov 112  }
  0x9e   : > { %1949 = vmatpush3.msra.mxu0 %v476_v1  ;;  %1960 = vmatpush3.msra.mxu1 %v563_v2  ;;  %v560_v8 = vld [vmem:[#allocation11] sm:$0xff]  ;;  %v472_v9 = vld [vmem:[%s2685_s23] sm:$0xff]  ;;  %v724_v25 = vld [vmem:[%s2693_s12] sm:$0x3]  ;;  %s2412_s4 = smov 104   ;;  %s1906_s0 = sshll.u32 %s2490_s19, 7 }
  0x9f   : > { %1950 = vmatprep.subr.mxu0 %v2407_v0  ;;  %1961 = vmatprep.subr.mxu1 %v2407_v0  ;;  %v1884_v11 = vld [vmem:[%s2894_s5] ss:$0 sm:$0xff]  ;;  %v645_v21 = vld [vmem:[#allocation13 + $0x18] sm:$0xff]  ;;  %v643_v23 = vld [vmem:[#allocation13 + $0x8] sm:$0xff]  ;;  %vm725_vm3 = vnez %v724_v25  ;;  %s469_s2 = scalar_lea.vmem [#allocation16], %s1875_s29  ;;  %s2851_s6 = scalar_lea.hbm %s2899_s10, %s1906_s0 }
  0xa0   : > { %1951 = vmatpush3.msra.mxu0 %v475_v3  ;;  %1962 = vmatpush3.msra.mxu1 %v562_v4  ;;  %v644_v22 = vld [vmem:[#allocation13 + $0x10] sm:$0xff]  ;;  %v642_v24 = vld [vmem:[#allocation13] sm:$0xff]  ;;  %v813_v27 = vsel %vm725_vm3, 16843009, %v2410_v26  ;;  %v1148_v63 = vld [vmem:[#allocation14 + $0x8] sm:$0xff]  ;;  %s1732_s20 = sshll.u32 %s469_s2, 4  ;;  %s1733_s20 = int_to_ptr.vmem [resolvable:$true] %s1732_s20 }
  0xa1   : > { %1952 = vmatprep.subr.mxu0 %v2407_v0  ;;  %1963 = vmatprep.subr.mxu1 %v2407_v0  ;;  %v814_v28 = vunpack.c.0.s8 %v813_v27  ;;  %v1886_v39 = vld [vmem:[%s2896_s7] ss:$0 sm:$0xff]  ;;  %v901_v49 = vld [vmem:[#allocation14] sm:$0xff]  ;;  %v1642_v29 = vld [vmem:[#allocation14 + $0x18] sm:$0xff]  ;;  %s1719_s17 = scalar_lea.sflag [#allocation7], %s2679_s18  ;;  %s2317_s25 = scalar_lea.vmem %s1733_s20, 128 }
  0xa2   : > { %1953 = vmatpush3.msra.mxu0 %v474_v5  ;;  %1964 = vmatpush3.msra.mxu1 %v561_v6  ;;  %p2318_p2 = scmp.ne.s32.totalorder %s1733_s20, %s2317_s25  ;;  %p2934_p9 = scmp.ne.s32.totalorder %s2918_s22, 0 }
  0xa3   : > { %1954 = vmatprep.subr.mxu0 %v2407_v0  ;;  %1965 = vmatprep.subr.mxu1 %v2407_v0  ;;  %vm2763_vm4 = vcmp.ne.s32.totalorder %v814_v28, 0  ;;  %s2413_s19 = smov [#allocation16]  }
  0xa4   : > { %1955 = vmatpush3.msra.mxu0 %v473_v7  ;;  %1966 = vmatpush3.msra.mxu1 %v560_v8  ;;  %p2319_p11 = pnand %p2318_p2, %p2934_p9  ;;  %s2321_s29 = sshll.u32 %s2413_s19, 4  ;;  %s2322_s29 = int_to_ptr.vmem [resolvable:$false] %s2321_s29 }
  0xa5   : > { %1957 = vmatmul.mubr.msk.f32.vlgmr.msra.gmra.mxu0 %vm484_vm1, %v472_v9  ;;  %1968 = vmatmul.mubr.msk.f32.vlgmr.msra.gmra.mxu1 %vm484_vm1, %v472_v9  ;;  %p2324_p1 = scmp.lt.s32.totalorder %s1733_s20, %s2322_s29 }
  0xa6   : > { %1981 = vmatprep.subr.mxu1 %v2407_v0  ;;  %1983 = vmatprep.mubr.msk.f32.mxu1 %vm2408_vm0, %v2407_v0  ;;  %p2320_p12 = pneg %p2319_p11 }
  0xa7   : > { %1970 = vmatprep.subr.mxu0 %v2407_v0  ;;  %1978 = vmatprep.mubr.msk.f32.mxu0 %vm2408_vm0, %v2407_v0 }
  0xa8   : > { %1971 = vmatpush3.msra.mxu0 %v645_v21 }
  0xa9   : > { %1972 = vmatprep.subr.mxu0 %v2407_v0 }
  0xaa   : > { %1973 = vmatpush3.msra.mxu0 %v644_v22 }
  0xab   : > { %1974 = vmatprep.subr.mxu0 %v2407_v0 }
  0xac   : > { %1975 = vmatpush3.msra.mxu0 %v643_v23 }
  0xad   : > { %1976 = vmatprep.subr.mxu0 %v2407_v0 }
  0xae   : > { %1977 = vmatpush3.msra.mxu0 %v642_v24 }
  0xaf   : > { %1979 = vmatmul.mubr.msk.f32.vlgmr.msra.gmra.mxu0 %vm484_vm1, %v472_v9  ;;  %1991 = vmatprep.subr.mxu0 %v2407_v0 }
  0xb0   : > { %1993 = vmatprep.mubr.msk.f32.mxu0 %vm2408_vm0, %v2407_v0  ;;  %1992 = vmatpush3.msra.mxu0 %v901_v49 }
  0xb1   : > { %2001 = vmatprep.subr.mxu0 %v2407_v0 }
 0x165   : > { %v554_v12 = vpop.f32.mrf.mxu0  ;;  %v637_v13 = vpop.f32.mrf.mxu1 }
 0x166   : > { %v555_v14 = vadd.f32 %v1882_v10, %v554_v12  ;;  %v638_v15 = vadd.f32 %v1884_v11, %v637_v13 }
 0x167   : > { %v1958_v16 = vpop.f32.mrf.mxu0  ;;  %v1969_v17 = vpop.f32.mrf.mxu1 }
 0x168   : > { %v558_v18 = vmul.f32 0.35355338, %v555_v14  ;;  %641 = vst.msk [vmem:[#allocation3] sm:$0xff] %vm484_vm1, %v638_v15 }
 0x16a   : > { %559 = vst.msk [vmem:[#allocation2] sm:$0xff] %vm484_vm1, %v558_v18 }
 0x16f   : > { %v2740_v19 = vld [vmem:[#allocation3] sm:$0xff]  ;;  %v719_v40 = vpop.f32.mrf.mxu0 }
 0x170   : > { %983 = vrot.lane.b32.xlu1 %v2740_v19, %s2409_s28  ;;  %1982 = vmatpush3.xpose.msk.msra.mxu1 %vm736_vm2, %v2740_v19  ;;  %v720_v41 = vadd.f32 %v1886_v39, %v719_v40 }
 0x171   : > { %v2746_v20 = vld [vmem:[#allocation2] sm:$0xff]  ;;  %1986 = vmatprep.subr.mxu1 %v2407_v0  ;;  %v1980_v42 = vpop.f32.mrf.mxu0 }
 0x172   : > { %723 = vst.msk [vmem:[#allocation4] sm:$0xff] %vm484_vm1, %v720_v41 }
 0x173   : > { %1984 = vmatmul.mubr.msk.f32.vlgmr.msra.gmra.mxu1 %vm736_vm2, %v2746_v20 }
 0x174   : > { %980 = vrot.lane.b32.xlu1 %v2746_v20, %s2409_s28  ;;  %1988 = vmatprep.mubr.msk.f32.mxu1 %vm2408_vm0, %v2407_v0 }
 0x179   : > { %v2775_v43 = vld [vmem:[#allocation4] sm:$0xff] }
 0x17a   : > { %1987 = vmatpush3.msra.mxu1 %v2775_v43 }
 0x17b   : > { %1996 = vmatprep.subr.mxu1 %v2407_v0 }
 0x1e2   : > { %v984_v46 = vpop.permute.xlu1 %983 }
 0x1e6   : > { %v981_v48 = vpop.permute.xlu1 %980 }
 0x233   : > { %v809_v30 = vpop.f32.mrf.mxu1 }
 0x234   : > { %v816_v31 = vsel %vm2763_vm4, %v809_v30, -1e+30  ;;  %v1395_v30 = vld [vmem:[#allocation14 + $0x10] sm:$0xff] }
 0x235   : > { %v1985_v32 = vpop.f32.mrf.mxu1  ;;  %v817_v33 = vsel %vm736_vm2, %v816_v31, -inf }
 0x236   : > { %818 = vmax.xlane.f32.xlu0 %v817_v33 }
 0x2bf   : > { %v819_v34 = vpop.xlane.xlu0 %818 }
 0x2c0   : > { %v820_v35 = vsub.f32 %v816_v31, %v819_v34 }
 0x2c2   : > { %v821_v36 = vmul.f32 1.442695, %v820_v35 }
 0x2c4   : > { %2141 = vpow2.f32 %v821_v36 }
 0x2d1   : > { %v2142_v37 = vpop.eup %2141 }
 0x2d2   : > { %v823_v38 = vsel %vm736_vm2, %v2142_v37, 0.0 }
 0x2d3   : > { %824 = vadd.xlane.f32.xlu0 %v823_v38 }
 0x35c   : > { %v825_v44 = vpop.xlane.xlu0 %824 }
 0x35d   : > { %2143 = vrcp.f32 %v825_v44 }
 0x36a   : > { %v2144_v45 = vpop.eup %2143 }
 0x36b   : > { %v827_v47 = vmul.f32 %v2144_v45, %v2142_v37 }
 0x36d   : > { %1989 = vmatmul.mubr.msk.f32.vlgmr.msra.gmra.mxu1 %vm736_vm2, %v827_v47 }
 0x36e   : > { %1997 = vmatpush3.xpose.msk.msra.mxu1 %vm736_vm2, %v984_v46  ;;  %1998 = vmatprep.mubr.msk.f32.mxu1 %vm2408_vm0, %v2407_v0 }
 0x36f   : > { %2006 = vmatprep.subr.mxu1 %v2407_v0 }
 0x371   : > { %1999 = vmatmul.mubr.msk.f32.vlgmr.msra.gmra.mxu1 %vm736_vm2, %v981_v48 }
 0x372   : > { %2008 = vmatprep.mubr.msk.f32.mxu1 %vm2408_vm0, %v2407_v0  ;;  %2007 = vmatpush3.msra.mxu1 %v1148_v63 }
 0x373   : > { %2016 = vmatprep.subr.mxu1 %v2407_v0 }
 0x42d   : > { %v897_v50 = vpop.f32.mrf.mxu1 }
 0x42e   : > { %1994 = vmatmul.mubr.msk.f32.vlgmr.msra.gmra.mxu0 %vm736_vm2, %v897_v50 }
 0x42f   : > { %v1990_v51 = vpop.f32.mrf.mxu1  ;;  %2003 = vmatprep.mubr.msk.f32.mxu0 %vm2408_vm0, %v2407_v0 }
 0x431   : > { %v1055_v52 = vpop.f32.mrf.mxu1 }
 0x432   : > { %v1059_v53 = vsel %vm2763_vm4, %v1055_v52, -1e+30 }
 0x433   : > { %v2000_v54 = vpop.f32.mrf.mxu1  ;;  %v1060_v55 = vsel %vm736_vm2, %v1059_v53, -inf }
 0x434   : > { %1061 = vmax.xlane.f32.xlu0 %v1060_v55 }
 0x44a   : > { %1072 = vrot.lane.b32.xlu0 %v2775_v43, %s2409_s28  ;;  %s2323_s28 = scalar_lea.vmem %s2322_s29, 256 }
 0x44b   : > { %p2325_p4 = scmp.lt.s32.totalorder %s2323_s28, %s2317_s25 }
 0x44d   : > { %p2326_p6 = por %p2325_p4, %p2324_p1 }
 0x44e   : > { %1230 = vrot.lane.b32.xlu0 %v2740_v19, %s2411_s26 }
 0x44f   : > { %p2327_p3 = pnand %p2326_p6, %p2320_p12 }
 0x452   : > { %1227 = vrot.lane.b32.xlu0 %v2746_v20, %s2411_s26 }
 0x4bd   : > { %v1062_v56 = vpop.xlane.xlu0 %1061 }
 0x4be   : > { %v1063_v57 = vsub.f32 %v1059_v53, %v1062_v56 }
 0x4c0   : > { %v1064_v58 = vmul.f32 1.442695, %v1063_v57 }
 0x4c1   : > { %v1073_v59 = vpop.permute.xlu0 %1072 }
 0x4c2   : > { %2145 = vpow2.f32 %v1064_v58  ;;  %2002 = vmatpush3.msra.mxu0 %v1073_v59 }
 0x4c3   : > { %2011 = vmatprep.subr.mxu0 %v2407_v0 }
 0x4c5   : > { %v1231_v4 = vpop.permute.xlu0 %1230 }
 0x4c9   : > { %v1228_v6 = vpop.permute.xlu0 %1227 }
 0x4cf   : > { %v2146_v60 = vpop.eup %2145 }
 0x4d0   : > { %v1066_v61 = vsel %vm736_vm2, %v2146_v60, 0.0 }
 0x4d1   : > { %1067 = vadd.xlane.f32.xlu1 %v1066_v61 }
 0x4e2   : > { %1319 = vrot.lane.b32.xlu1 %v2775_v43, %s2411_s26 }
 0x4e6   : > { %1477 = vrot.lane.b32.xlu1 %v2740_v19, %s2412_s4  ;;  %v1888_v19 = vld [vmem:[%s2898_s9] ss:$0 sm:$0xff] }
 0x4ee   : > { %v971_v62 = vpop.f32.mrf.mxu0 }
 0x4ef   : > { %v975_v21 = vadd.f32 %v1888_v19, %v971_v62 }
 0x4f0   : > { %v1995_v1 = vpop.f32.mrf.mxu0 }
 0x55a   : > { %v1068_v2 = vpop.xlane.xlu1 %1067 }
 0x55b   : > { %2147 = vrcp.f32 %v1068_v2 }
 0x55e   : > { %v1320_v8 = vpop.permute.xlu1 %1319 }
 0x562   : > { %v1478_v25 = vpop.permute.xlu1 %1477 }
 0x568   : > { %v2148_v3 = vpop.eup %2147 }
 0x569   : > { %v1070_v5 = vmul.f32 %v2148_v3, %v2146_v60 }
 0x56b   : > { %2004 = vmatmul.mubr.msk.f32.vlgmr.msra.gmra.mxu0 %vm736_vm2, %v1070_v5 }
 0x56c   : > { %2012 = vmatpush3.xpose.msk.msra.mxu0 %vm736_vm2, %v1231_v4  ;;  %2013 = vmatprep.mubr.msk.f32.mxu0 %vm2408_vm0, %v2407_v0 }
 0x56d   : > { %2021 = vmatprep.subr.mxu0 %v2407_v0 }
 0x56f   : > { %2014 = vmatmul.mubr.msk.f32.vlgmr.msra.gmra.mxu0 %vm736_vm2, %v1228_v6 }
 0x570   : > { %2023 = vmatprep.mubr.msk.f32.mxu0 %vm2408_vm0, %v2407_v0  ;;  %2022 = vmatpush3.msra.mxu0 %v1395_v30 }
 0x571   : > { %2031 = vmatprep.subr.mxu0 %v2407_v0 }
 0x62b   : > { %v1144_v7 = vpop.f32.mrf.mxu0 }
 0x62c   : > { %2009 = vmatmul.mubr.msk.f32.vlgmr.msra.gmra.mxu1 %vm736_vm2, %v1144_v7 }
 0x62d   : > { %2017 = vmatpush3.msra.mxu1 %v1320_v8  ;;  %v2005_v9 = vpop.f32.mrf.mxu0  ;;  %2018 = vmatprep.mubr.msk.f32.mxu1 %vm2408_vm0, %v2407_v0 }
 0x62e   : > { %2026 = vmatprep.subr.mxu1 %v2407_v0 }
 0x62f   : > { %v1302_v10 = vpop.f32.mrf.mxu0 }
 0x630   : > { %v1306_v11 = vsel %vm2763_vm4, %v1302_v10, -1e+30 }
 0x631   : > { %v2015_v12 = vpop.f32.mrf.mxu0  ;;  %v1307_v13 = vsel %vm736_vm2, %v1306_v11, -inf }
 0x632   : > { %1308 = vmax.xlane.f32.xlu0 %v1307_v13 }
 0x6bb   : > { %v1309_v14 = vpop.xlane.xlu0 %1308 }
 0x6bc   : > { %v1310_v15 = vsub.f32 %v1306_v11, %v1309_v14 }
 0x6be   : > { %v1311_v16 = vmul.f32 1.442695, %v1310_v15 }
 0x6c0   : > { %2149 = vpow2.f32 %v1311_v16 }
 0x6cd   : > { %v2150_v17 = vpop.eup %2149 }
 0x6ce   : > { %v1313_v18 = vsel %vm736_vm2, %v2150_v17, 0.0 }
 0x6cf   : > { %1314 = vadd.xlane.f32.xlu1 %v1313_v18 }
 0x6e0   : > { %1474 = vrot.lane.b32.xlu1 %v2746_v20, %s2412_s4 }
 0x6ec   : > { %v1218_v22 = vpop.f32.mrf.mxu1 }
 0x6ed   : > { %v1222_v23 = vadd.f32 %v1218_v22, %v975_v21 }
 0x6ee   : > { %v2010_v24 = vpop.f32.mrf.mxu1 }
 0x758   : > { %v1315_v26 = vpop.xlane.xlu1 %1314 }
 0x759   : > { %2151 = vrcp.f32 %v1315_v26 }
 0x75c   : > { %v1475_v20 = vpop.permute.xlu1 %1474 }
 0x766   : > { %v2152_v27 = vpop.eup %2151 }
 0x767   : > { %v1317_v28 = vmul.f32 %v2152_v27, %v2150_v17 }
 0x769   : > { %2019 = vmatmul.mubr.msk.f32.vlgmr.msra.gmra.mxu1 %vm736_vm2, %v1317_v28 }
 0x76a   : > { %2027 = vmatpush3.xpose.msk.msra.mxu1 %vm736_vm2, %v1478_v25  ;;  %2028 = vmatprep.mubr.msk.f32.mxu1 %vm2408_vm0, %v2407_v0 }
 0x76b   : > { %2036 = vmatprep.subr.mxu1 %v2407_v0 }
 0x76d   : > { %2029 = vmatmul.mubr.msk.f32.vlgmr.msra.gmra.mxu1 %vm736_vm2, %v1475_v20 }
 0x76e   : > { %2038 = vmatprep.mubr.msk.f32.mxu1 %vm2408_vm0, %v2407_v0  ;;  %2037 = vmatpush3.msra.mxu1 %v1642_v29 }
 0x829   : > { %v1391_v31 = vpop.f32.mrf.mxu1 }
 0x82a   : > { %2024 = vmatmul.mubr.msk.f32.vlgmr.msra.gmra.mxu0 %vm736_vm2, %v1391_v31 }
 0x82b   : > { %v2020_v32 = vpop.f32.mrf.mxu1  ;;  %2033 = vmatprep.mubr.msk.f32.mxu0 %vm2408_vm0, %v2407_v0 }
 0x82d   : > { %v1549_v33 = vpop.f32.mrf.mxu1 }
 0x82e   : > { %v1553_v34 = vsel %vm2763_vm4, %v1549_v33, -1e+30 }
 0x82f   : > { %v2030_v35 = vpop.f32.mrf.mxu1  ;;  %v1554_v36 = vsel %vm736_vm2, %v1553_v34, -inf }
 0x830   : > { %1555 = vmax.xlane.f32.xlu0 %v1554_v36 }
 0x846   : > { %1566 = vrot.lane.b32.xlu0 %v2775_v43, %s2412_s4 }
 0x8b9   : > { %v1556_v37 = vpop.xlane.xlu0 %1555 }
 0x8ba   : > { %v1557_v38 = vsub.f32 %v1553_v34, %v1556_v37 }
 0x8bc   : > { %v1558_v39 = vmul.f32 1.442695, %v1557_v38 }
 0x8bd   : > { %v1567_v40 = vpop.permute.xlu0 %1566 }
 0x8be   : > { %2153 = vpow2.f32 %v1558_v39  ;;  %2032 = vmatpush3.msra.mxu0 %v1567_v40 }
 0x8cb   : > { %v2154_v41 = vpop.eup %2153 }
 0x8cc   : > { %v1560_v0 = vsel %vm736_vm2, %v2154_v41, 0.0 }
 0x8cd   : > { %1561 = vadd.xlane.f32.xlu1 %v1560_v0 }
 0x8ea   : > { %v1465_v42 = vpop.f32.mrf.mxu0 }
 0x8eb   : > { %v1469_v44 = vadd.f32 %v1465_v42, %v1222_v23 }
 0x8ec   : > { %v2025_v45 = vpop.f32.mrf.mxu0 }
 0x956   : > { %v1562_v46 = vpop.xlane.xlu1 %1561 }
 0x957   : > { %2155 = vrcp.f32 %v1562_v46 }
 0x964   : > { %v2156_v43 = vpop.eup %2155 }
 0x965   : > { %v1564_v47 = vmul.f32 %v2156_v43, %v2154_v41 }
 0x967   : > { %2034 = vmatmul.mubr.msk.f32.vlgmr.msra.gmra.mxu0 %vm736_vm2, %v1564_v47 }
 0xa27   : > { %v1638_v48 = vpop.f32.mrf.mxu0 }
 0xa28   : > { %2039 = vmatmul.mubr.msk.f32.vlgmr.msra.gmra.mxu1 %vm736_vm2, %v1638_v48 }
 0xa29   : > { %v2035_v49 = vpop.f32.mrf.mxu0 }
 0xae8   : > { %v1712_v50 = vpop.f32.mrf.mxu1 }
 0xae9   : > { %v1716_v51 = vadd.f32 %v1712_v50, %v1469_v44 }
 0xaea   : > { %v2040_v52 = vpop.f32.mrf.mxu1 }
 0xaeb   : > { %1717 = vst.msk [vmem:[%s469_s2] sm:$0xff] %vm484_vm1, %v1716_v51 }
 0xaec   : > { %2330 = shalt.err (!%p2327_p3)
}
 0xaed   : > { %s2331_s21 = scalar_lea.hbm %s2851_s6, 128  ;;  %s2335_s26 = scalar_lea.hbm %s2899_s10, 256 }
 0xaee   : > { %p2332_p7 = scmp.ne.s32.totalorder %s2851_s6, %s2331_s21  ;;  %p2336_p8 = scmp.lt.s32.totalorder %s2851_s6, %s2899_s10 }
 0xaef   : > { %p2337_p13 = scmp.lt.s32.totalorder %s2335_s26, %s2331_s21 }
 0xaf0   : > { %p2333_p10 = pnand %p2332_p7, %p2934_p9 }
 0xaf1   : > { %p2338_p0 = por %p2337_p13, %p2336_p8 }
 0xaf2   : > { %p2334_p5 = pneg %p2333_p10 }
 0xaf4   : > { %p2339_p2 = pnand %p2338_p0, %p2334_p5 }
 0xaf6   : > { %2342 = shalt.err (!%p2339_p2)
}
 0xaf7   : > { %2061 = dma.vmem_to_hbm [thread:$0]  (%p2934_p9), %s1733_s20, 128, %s2851_s6, %s1719_s17  }
 0xaf8 PF: > { %s1744_s23 = sand.u32 1, %s2385_s13   ;;  %p2935_p11 = scmp.ne.s32.totalorder %s2919_s24, 0 }
 0xaf9   : > { %p2936_p12 = scmp.ge.s32.totalorder %s2397_s16, 2  ;;  %s1745_s0 = scalar_lea.sflag [#allocation7], %s1744_s23 }
 0xafb   : > { %p2084_p1 = pnand %p2936_p12, %p2935_p11 }
 0xafd   : > { %p2085_p4 = pneg %p2084_p1 }
 0xaff   : > { %2380 = dma.done.wait (%p2085_p4), %s1745_s0, 128  }
 0xb00   : > { %2382 = vsyncadd (%p2085_p4), %s1745_s0, 4294967168  ;;  %s2937_s2 = sld [smem:[#allocation23_spill]]  ;;  %p28_p6 = scmp.ge.s32.totalorder %s2570_s11, 4  }
 0xb01   : > { %s2938_s13 = smov %s2389_s14  ;;  %s2939_s14 = smov %s2393_s15 }
 0xb02   : > { %s2941_s16 = smov %s2570_s11  ;;  %30 = sbr.rel (!%p28_p6) target bundleno = 15 (0xf), region = 134 }
 0xb06   : > { %s2940_s15 = smov %s2937_s2 }
 0xb07   :  { %1750 = vsyncpa [#allocation6], 1 }
 0xb08   :  { %1752 = vsyncpa [#allocation6 + $0x1], 1 }
 0xb09   :  { %1753 = vsyncpa [#allocation9], 1 }
 0xb0a   :  { %1755 = vsyncpa [#allocation9 + $0x1], 1 }
 0xb0b   :  { %1756 = vsyncpa [#allocation12], 1 }
 0xb0c   :  { %1757 = vsyncpa [#allocation15], 1 }
 0xb0d   :  { %1758 = vsyncpa [#allocation7], 1 }
 0xb0e   :  { %1760 = vsyncpa [#allocation7 + $0x1], 1 }

</bundles_post_ra>
